<compile_context>
chip_gen: v6e
topology: v6e:2x2x1
jax: 0.10.0
libtpu: 0.0.40
codegen_flags: <defaults>
</compile_context>

<pallas_src>
import jax
import jax.numpy as jnp
from jax.experimental import pallas as pl
from jax.experimental.pallas import tpu as pltpu

FEATURE_DIM = 1000  # the "1000" in torch.nn.Linear(1000, output_size)


def _round_up(x, m):
    return (x + m - 1) // m * m


# ----------------------------------------------------------------------------
# Kernel: one (tm, tn) output tile, reduced over the K grid axis.
# ----------------------------------------------------------------------------
def _fused_linear_kernel(x_ref, w_ref, b_ref, o_ref, acc_ref):
    k = pl.program_id(2)

    @pl.when(k == 0)
    def _():
        acc_ref[...] = jnp.zeros_like(acc_ref)

    # bf16 x bf16 -> f32 accumulate on the MXU.
    acc_ref[...] += jnp.dot(x_ref[...], w_ref[...],
                            preferred_element_type=jnp.float32)

    @pl.when(k == pl.num_programs(2) - 1)
    def _():
        o_ref[...] = (acc_ref[...] + b_ref[...]).astype(o_ref.dtype)


# ----------------------------------------------------------------------------
# Parameter construction (PyTorch-style init) and fold/pad/cast preparation.
# ----------------------------------------------------------------------------
def init_params(key, in_dim, output_size):
    """PyTorch-style Linear init (uniform +-1/sqrt(fan_in)), pre-transposed."""
    k1, k2, k3, k4 = jax.random.split(key, 4)
    bound1 = 1.0 / jnp.sqrt(in_dim)
    bound2 = 1.0 / jnp.sqrt(FEATURE_DIM)
    w1 = jax.random.uniform(k1, (in_dim, FEATURE_DIM), jnp.float32, -bound1, bound1)
    b1 = jax.random.uniform(k2, (1, FEATURE_DIM), jnp.float32, -bound1, bound1)
    w2 = jax.random.uniform(k3, (FEATURE_DIM, output_size), jnp.float32, -bound2, bound2)
    b2 = jax.random.uniform(k4, (1, output_size), jnp.float32, -bound2, bound2)
    return {"w1": w1, "b1": b1, "w2": w2, "b2": b2}


def fuse_and_pad_params(params):
    """Fold backbone-Linear + classify-Linear, pad to tiles, cast W to bf16."""
    w1, b1, w2, b2 = params["w1"], params["b1"], params["w2"], params["b2"]

    # (x @ w1 + b1) @ w2 + b2  ==  x @ (w1 @ w2) + (b1 @ w2 + b2)   (exact: linear)
    w_f = (w1 @ w2).astype(jnp.float32)        # (D_in, out)
    b_f = (b1 @ w2 + b2).astype(jnp.float32)   # (1, out)

    K, N = w_f.shape
    tk = min(512, _round_up(K, 128))           # K tile (<=512, lane-aligned)
    k_pad = _round_up(K, tk)
    n_pad = _round_up(N, 128)                  # lane-dense output
    tn = 128

    w_p = jnp.pad(w_f, ((0, k_pad - K), (0, n_pad - N))).astype(jnp.bfloat16)
    b_p = jnp.pad(b_f, ((0, 0), (0, n_pad - N)))          # f32 bias (v5e: f32 VPU)
    return {"w": w_p, "b": b_p, "tk": tk, "tn": tn,
            "k_pad": k_pad, "n_pad": n_pad, "output_size": N}


# ----------------------------------------------------------------------------
# Forward wrapper (== build_modelV2.forward).
# ----------------------------------------------------------------------------
def build_modelV2_forward(x_nchw, fused):
    """x_nchw: (B, C, H, W) float32; returns (B, output_size) f32 logits."""
    b_sz = x_nchw.shape[0]
    x_flat = x_nchw.reshape(b_sz, -1)           # row-major, matches torch.flatten
    k_dim = x_flat.shape[1]

    w, bias = fused["w"], fused["b"]
    tk, tn = fused["tk"], fused["tn"]
    k_pad, n_pad = fused["k_pad"], fused["n_pad"]
    out_size = fused["output_size"]

    # Pad batch so the sublane extent is tile-friendly (16 covers bf16 packing).
    if b_sz <= 512:
        m_pad = _round_up(b_sz, 16)
        tm = m_pad
    else:
        m_pad = _round_up(b_sz, 128)
        tm = 128

    x_p = jnp.pad(x_flat.astype(jnp.bfloat16),
                  ((0, m_pad - b_sz), (0, k_pad - k_dim)))

    grid = (m_pad // tm, n_pad // tn, k_pad // tk)

    cost = pl.CostEstimate(
        flops=2 * m_pad * k_pad * n_pad,
        transcendentals=0,
        bytes_accessed=(x_p.size * 2 + w.size * 2 + bias.size * 4
                        + m_pad * n_pad * 4),
    )

    out = pl.pallas_call(
        _fused_linear_kernel,
        out_shape=jax.ShapeDtypeStruct((m_pad, n_pad), jnp.float32),
        grid_spec=pltpu.PrefetchScalarGridSpec(
            num_scalar_prefetch=0,
            grid=grid,
            in_specs=[
                pl.BlockSpec((tm, tk), lambda i, j, k: (i, k)),   # activations
                pl.BlockSpec((tk, tn), lambda i, j, k: (k, j)),   # fused weight
                pl.BlockSpec((1, tn), lambda i, j, k: (0, j)),    # fused bias
            ],
            out_specs=pl.BlockSpec((tm, tn), lambda i, j, k: (i, j)),
            scratch_shapes=[pltpu.VMEM((tm, tn), jnp.float32)],
        ),
        compiler_params=pltpu.CompilerParams(
            dimension_semantics=("parallel", "parallel", "arbitrary")),
        cost_estimate=cost,
    )(x_p, w, bias)

    return out[:b_sz, :out_size]


if __name__ == "__main__":
    # Small, module-consistent shapes: NCHW image batch + output_size actions.
    B, C, H, W = 2, 4, 16, 16
    OUTPUT_SIZE = 10

    key = jax.random.PRNGKey(0)
    kx, kp = jax.random.split(key)
    x = jax.random.normal(kx, (B, C, H, W), jnp.float32)

    params = init_params(kp, C * H * W, OUTPUT_SIZE)
    fused = fuse_and_pad_params(params)

    logits = build_modelV2_forward(x, fused)
    logits = jax.block_until_ready(logits)

    # Reference in plain f32 JAX (unfused two-layer math, outside Pallas).
    ref = (x.reshape(B, -1) @ params["w1"] + params["b1"]) @ params["w2"] + params["b2"]
    assert logits.shape == (B, OUTPUT_SIZE)
    # bf16 matmul operands (f32 accumulation) -> loosen tolerance accordingly.
    assert jnp.allclose(logits, ref, atol=5e-2, rtol=5e-2), (
        float(jnp.max(jnp.abs(logits - ref))))

    print("KERNEL_OK")
</pallas_src>

<mosaic_0001>
module attributes {stable_mosaic.version = 11 : i64} {
  func.func @_fused_linear_kernel(%arg0: i32, %arg1: i32, %arg2: i32, %arg3: memref<16x512xbf16, #tpu.memory_space<vmem>>, %arg4: memref<512x128xbf16, #tpu.memory_space<vmem>>, %arg5: memref<1x128xf32, #tpu.memory_space<vmem>>, %arg6: memref<16x128xf32, #tpu.memory_space<vmem>>, %arg7: memref<16x128xf32, #tpu.memory_space<vmem>>) attributes {dimension_semantics = [#tpu.dimension_semantics<parallel>, #tpu.dimension_semantics<parallel>, #tpu.dimension_semantics<arbitrary>], iteration_bounds = array<i64: 1, 1, 2>, scalar_prefetch = 0 : i64, scratch_operands = 1 : i64, tpu.core_type = #tpu.core_type<tc>, window_params = [{transform_indices = @transform_0, window_bounds = array<i64: 16, 512>}, {transform_indices = @transform_1, window_bounds = array<i64: 512, 128>}, {transform_indices = @transform_2, window_bounds = array<i64: 1, 128>}, {transform_indices = @transform_3, window_bounds = array<i64: 16, 128>}]} {
    %c0_i32 = arith.constant 0 : i32
    %0 = arith.cmpi eq, %arg2, %c0_i32 : i32
    %1 = arith.extui %0 : i1 to i32
    %c0_i32_0 = arith.constant 0 : i32
    %2 = arith.cmpi ne, %1, %c0_i32_0 : i32
    scf.if %2 {
      %cst_9 = arith.constant 0.000000e+00 : f32
      %12 = vector.broadcast %cst_9 : f32 to vector<16x128xf32>
      %c0_10 = arith.constant 0 : index
      %c0_11 = arith.constant 0 : index
      %13 = vector.load %arg7[%c0_10, %c0_11] : memref<16x128xf32, #tpu.memory_space<vmem>>, vector<16x128xf32>
      tpu.vector_store %arg7[%c0_10, %c0_11], %12 {strides = array<i32>} : memref<16x128xf32, #tpu.memory_space<vmem>>, vector<16x128xf32>,
    } else {
    }
    %c0 = arith.constant 0 : index
    %c0_1 = arith.constant 0 : index
    %3 = vector.load %arg7[%c0, %c0_1] : memref<16x128xf32, #tpu.memory_space<vmem>>, vector<16x128xf32>
    %c0_2 = arith.constant 0 : index
    %c0_3 = arith.constant 0 : index
    %4 = vector.load %arg3[%c0_2, %c0_3] : memref<16x512xbf16, #tpu.memory_space<vmem>>, vector<16x512xbf16>
    %c0_4 = arith.constant 0 : index
    %c0_5 = arith.constant 0 : index
    %5 = vector.load %arg4[%c0_4, %c0_5] : memref<512x128xbf16, #tpu.memory_space<vmem>>, vector<512x128xbf16>
    %cst = arith.constant dense<0.000000e+00> : vector<16x128xf32>
    %6 = tpu.matmul %4, %5, %cst {dimension_numbers = #tpu.dot_dimension_numbers<[1], [0], [0], [1], [0, 0, 1, 1], [], []>} : vector<16x512xbf16>, vector<512x128xbf16>, vector<16x128xf32> -> vector<16x128xf32>
    %7 = arith.addf %3, %6 : vector<16x128xf32>
    %c0_6 = arith.constant 0 : index
    %c0_7 = arith.constant 0 : index
    %8 = vector.load %arg7[%c0_6, %c0_7] : memref<16x128xf32, #tpu.memory_space<vmem>>, vector<16x128xf32>
    tpu.vector_store %arg7[%c0_6, %c0_7], %7 {strides = array<i32>} : memref<16x128xf32, #tpu.memory_space<vmem>>, vector<16x128xf32>,
    %c1_i32 = arith.constant 1 : i32
    %9 = arith.cmpi eq, %arg2, %c1_i32 : i32
    %10 = arith.extui %9 : i1 to i32
    %c0_i32_8 = arith.constant 0 : i32
    %11 = arith.cmpi ne, %10, %c0_i32_8 : i32
    scf.if %11 {
      %c0_9 = arith.constant 0 : index
      %c0_10 = arith.constant 0 : index
      %12 = vector.load %arg7[%c0_9, %c0_10] : memref<16x128xf32, #tpu.memory_space<vmem>>, vector<16x128xf32>
      %c0_11 = arith.constant 0 : index
      %c0_12 = arith.constant 0 : index
      %13 = vector.load %arg5[%c0_11, %c0_12] : memref<1x128xf32, #tpu.memory_space<vmem>>, vector<1x128xf32>
      %14 = vector.broadcast %13 : vector<1x128xf32> to vector<16x128xf32>
      %15 = arith.addf %12, %14 : vector<16x128xf32>
      %c0_13 = arith.constant 0 : index
      %c0_14 = arith.constant 0 : index
      %16 = vector.load %arg6[%c0_13, %c0_14] : memref<16x128xf32, #tpu.memory_space<vmem>>, vector<16x128xf32>
      tpu.vector_store %arg6[%c0_13, %c0_14], %15 {strides = array<i32>} : memref<16x128xf32, #tpu.memory_space<vmem>>, vector<16x128xf32>,
    } else {
    }
    return
  }
  func.func @transform_0(%arg0: i32, %arg1: i32, %arg2: i32) -> (i32, i32) {
    %c0_i32 = arith.constant 0 : i32
    return %arg0, %arg2 : i32, i32
  }
  func.func @transform_1(%arg0: i32, %arg1: i32, %arg2: i32) -> (i32, i32) {
    %c0_i32 = arith.constant 0 : i32
    return %arg2, %arg1 : i32, i32
  }
  func.func @transform_2(%arg0: i32, %arg1: i32, %arg2: i32) -> (i32, i32) {
    %c0_i32 = arith.constant 0 : i32
    %c0_i32_0 = arith.constant 0 : i32
    return %c0_i32, %arg1 : i32, i32
  }
  func.func @transform_3(%arg0: i32, %arg1: i32, %arg2: i32) -> (i32, i32) {
    %c0_i32 = arith.constant 0 : i32
    return %arg0, %arg1 : i32, i32
  }
}

</mosaic_0001>

<bundles_post_ra>
// kernel: tpu_custom_call.1
= control target key start
LH: loop header
LB: loop body
LE: loop exit
PB: predicated region body
PF: predicated region fallthrough
CT: control target
= control target key end

     0   :  { %8 = vsyncpa [#allocation4], 0  ;;  %s1351_s0 = inlined_call_operand.hbm [shape: bf16[16,1024], index: 0, kind: input, shape index: {}]   ;;  %s1352_s1 = inlined_call_operand.hbm [shape: bf16[1024,128], index: 1, kind: input, shape index: {}]   ;;  %s1353_s2 = inlined_call_operand.vmem [shape: f32[1,128], index: 2, kind: input, shape index: {}]   ;;  %s1354_s3 = inlined_call_operand.hbm [shape: f32[16,128], index: 3, kind: output, shape index: {}]  }
   0x1   :  { %10 = vsyncpa [#allocation4 + $0x1], 0 }
   0x2   :  { %11 = vsyncpa [#allocation7], 0 }
   0x3   :  { %13 = vsyncpa [#allocation7 + $0x1], 0 }
   0x4   :  { %14 = vsyncpa [#allocation5], 0  ;;  %s1166_s12 = smov 0   ;;  %s1168_s13 = smov 0  }
   0x5   :  { %s1170_s14 = smov 0   ;;  %s1172_s15 = smov 0  }
   0x6   :  { %s1174_s16 = smov 0   ;;  %s1176_s17 = smov 0  }
   0x7 LB: > { %s780_s18 = sadd.s32 4294967295, %s1133_s17   ;;  %s32_s19 = sadd.s32 1, %s1129_s16  ;;  %s1133_s17 = sphi %s1176_s17, %s20_s17   ;;  %s1129_s16 = sphi %s1174_s16, %s1364_s16   ;;  %s1125_s15 = sphi %s1172_s15, %s1363_s15   ;;  %s1121_s14 = sphi %s1170_s14, %s1362_s14   ;;  %s1117_s13 = sphi %s1168_s13, %s1361_s13   ;;  %s1113_s12 = sphi %s1166_s12, %s1360_s12  }
   0x8   : > { %p33_p0 = scmp.ge.s32.totalorder %s32_s19, 2  ;;  %s48_s20 = sadd.s32 1, %s1121_s14 }
   0x9   : > { %p55_p1 = scmp.ne.s32.totalorder %s1121_s14, %s1117_s13  ;;  %p56_p2 = scmp.eq.s32.totalorder %s1133_s17, 0 }
   0xa   : > { %s1366_s19 = smov (%p33_p0, %s32_s19), 0  ;;  %p61_p4 = scmp.ne.s32.totalorder %s1117_s13, %s1113_s12 }
   0xb   : > { %p1202_p3 = por %p56_p2, %p55_p1  ;;  %s44_s22 = ssub.s32 %s1129_s16, %s1366_s19 }
   0xc   : > { %p62_p5 = scmp.eq.s32.totalorder %s780_s18, 0  ;;  %p46_p6 = scmp.eq.s32.totalorder %s44_s22, 0 }
   0xd   : > { %p897_p8 = scmp.lt.s32.totalorder %s1133_s17, 2  ;;  %s1220_s25 = sand.u32 1, %s1121_s14  }
   0xe   : > { %p1211_p7 = por %p62_p5, %p61_p4  ;;  %s836_s26 = sshll.u32 %s1129_s16, 8 }
   0xf   : > { %s1217_s24 = scalar_select %p46_p6, %s1121_s14, %s48_s20  }
  0x10   : > { %s784_s27 = sshll.u32 %s1220_s25, 5  ;;  %s186_s30 = scalar_lea.hbm %s1351_s0, %s836_s26 }
  0x11   : > { %s177_s4 = scalar_lea.vmem [#allocation3], %s784_s27  ;;  %p1229_p9 = pnand %p897_p8, %p1202_p3 }
  0x12   : > { %s187_s5 = sshll.u32 %s177_s4, 4  ;;  %p790_p10 = scmp.ge.s32.totalorder %s1133_s17, 1  ;;  %s188_s5 = int_to_ptr.vmem [resolvable:$true] %s187_s5 }
  0x13   : > { %s174_s7 = scalar_lea.sflag [#allocation4], %s1220_s25  ;;  %p997_p11 = pneg %p1229_p9 }
  0x14   : > { %s1008_s8 = scalar_lea.vmem %s188_s5, 512  ;;  %s1135_s9 = smov [#allocation3]  }
  0x15   : > { %p1009_p12 = scmp.ne.s32.totalorder %s188_s5, %s1008_s8  ;;  %s1013_s10 = sshll.u32 %s1135_s9, 4  ;;  %s1014_s10 = int_to_ptr.vmem [resolvable:$false] %s1013_s10 }
  0x16   : > { %s1015_s11 = scalar_lea.vmem %s1014_s10, 1024  ;;  %p1016_p1 = scmp.lt.s32.totalorder %s188_s5, %s1014_s10 }
  0x17   : > { %p1011_p13 = pnand %p1009_p12, %p997_p11  ;;  %p1017_p2 = scmp.lt.s32.totalorder %s1015_s11, %s1008_s8 }
  0x19   : > { %p1012_p0 = pneg %p1011_p13  ;;  %p1018_p3 = por %p1017_p2, %p1016_p1 }
  0x1b   : > { %p1019_p4 = pnand %p1018_p3, %p1012_p0 }
  0x1d   : > { %1022 = shalt.err (!%p1019_p4)
}
  0x1e   : > { %s1136_s12 = smov 512   ;;  %s1137_s20 = smov 256  }
  0x1f   : > { %s1138_s21 = smov 16   ;;  %p217_p5 = scmp.lt.s32.totalorder %s1133_s17, 3 }
  0x20   : > { %893 = dma.hbm_to_vmem [thread:$0]  (!%p1229_p9), %s186_s30, 512, %s188_s5, %s174_s7, %s1136_s12, %s1137_s20, %s1138_s21  }
  0x21   : > { %s787_s22 = sshll.u32 %s1220_s25, 8  ;;  %s837_s26 = sshll.u32 %s1129_s16, 12 }
  0x22   : > { %p1247_p6 = pnand %p790_p10, %p217_p5  ;;  %s208_s4 = scalar_lea.hbm %s1352_s1, %s837_s26 }
  0x23   : > { %s201_s8 = scalar_lea.vmem [#allocation6], %s787_s22  ;;  %s198_s10 = scalar_lea.sflag [#allocation7], %s1220_s25 }
  0x24   : > { %s209_s9 = sshll.u32 %s201_s8, 4  ;;  %s1139_s30 = smov [#allocation6]   ;;  %s210_s9 = int_to_ptr.vmem [resolvable:$true] %s209_s9 }
  0x25   : > { %s1036_s11 = scalar_lea.vmem %s210_s9, 4096  ;;  %s1041_s5 = sshll.u32 %s1139_s30, 4  ;;  %s1042_s5 = int_to_ptr.vmem [resolvable:$false] %s1041_s5 }
  0x26   : > { %p1037_p8 = scmp.ne.s32.totalorder %s210_s9, %s1036_s11  ;;  %s1043_s7 = scalar_lea.vmem %s1042_s5, 8192 }
  0x27   : > { %p1044_p10 = scmp.lt.s32.totalorder %s210_s9, %s1042_s5  ;;  %p1045_p0 = scmp.lt.s32.totalorder %s1043_s7, %s1036_s11 }
  0x28   : > { %p1039_p12 = pnand %p1037_p8, %p997_p11 }
  0x29   : > { %p1046_p1 = por %p1045_p0, %p1044_p10 }
  0x2a   : > { %p1040_p13 = pneg %p1039_p12 }
  0x2c   : > { %p1047_p2 = pnand %p1046_p1, %p1040_p13 }
  0x2e   : > { %1050 = shalt.err (!%p1047_p2)
}
  0x2f   : > { %s1140_s12 = smov 64   ;;  %s1141_s20 = smov 4  }
  0x30   : > { %896 = dma.hbm_to_vmem [thread:$0]  (!%p1229_p9), %s208_s4, 4096, %s210_s9, %s198_s10, %s1140_s12, %s1140_s12, %s1141_s20  }
  0x31   : > { %221 = sbr.rel (%p1247_p6) target bundleno = 334 (0x14e), region = 32  ;;  %s223_s25 = sand.u32 (!%p1247_p6), 1, %s1117_s13  }
  0x32   : > { %s791_s21 = sshll.u32 (!%p1247_p6), %s223_s25, 5  ;;  %s224_s22 = scalar_lea.sflag (!%p1247_p6), [#allocation4], %s223_s25 }
  0x33   : > { %s1263_s26 = scalar_lea.vmem (!%p1247_p6), [#allocation3], %s791_s21 }
  0x36   : > { %1100 = dma.done.wait (%p1211_p7), %s224_s22, 512  }
  0x37   : > { %1102 = vsyncadd (%p1211_p7), %s224_s22, 4294966784  ;;  %s792_s28 = sshll.u32 %s223_s25, 8  ;;  %s233_s29 = scalar_lea.sflag [#allocation7], %s223_s25 }
  0x38   : > { %s1269_s6 = scalar_lea.vmem [#allocation6], %s792_s28 }
  0x39   : > { %1104 = dma.done.wait (%p1211_p7), %s233_s29, 4096  }
  0x3a   : > { %1106 = vsyncadd (%p1211_p7), %s233_s29, 4294963200  ;;  %p793_p9 = scmp.ne.s32.totalorder %s1125_s15, 0 }
  0x3c   : > { %273 = sbr.rel (%p793_p9) target bundleno = 67 (0x43), region = 44 }
  0x41   : > { %v1142_v0 = vmov 0.0  }
  0x42   : > { %274 = vst [vmem:[#allocation2] sm:$0xff] %v1142_v0  ;;  %275 = vst [vmem:[#allocation2 + $0x8] sm:$0xff] %v1142_v0 }
  0x43 PF: > { %v957_v1 = vld [vmem:[%s1269_s6 + $0x78] sm:$0xff]   ;;  %v961_v5 = vld [vmem:[%s1269_s6 + $0x70] sm:$0xff]   ;;  %v965_v9 = vld [vmem:[%s1269_s6 + $0x68] sm:$0xff]   ;;  %p830_p7 = scmp.ne.s32.totalorder %s1125_s15, 1 }
  0x44   : > { %v958_v2 = vld [vmem:[%s1269_s6 + $0xf8] sm:$0xff]   ;;  %838 = vmatprep.subr.bf16.mxu0 %v957_v1  ;;  %v962_v6 = vld [vmem:[%s1269_s6 + $0xf0] sm:$0xff]   ;;  %v966_v10 = vld [vmem:[%s1269_s6 + $0xe8] sm:$0xff]  }
  0x45   : > { %v959_v3 = vld [vmem:[%s1269_s6 + $0x38] sm:$0xff]   ;;  %860 = vmatprep.subr.bf16.mxu1 %v958_v2  ;;  %v963_v7 = vld [vmem:[%s1269_s6 + $0x30] sm:$0xff]   ;;  %v967_v11 = vld [vmem:[%s1269_s6 + $0x28] sm:$0xff]  }
  0x46   : > { %v960_v4 = vld [vmem:[%s1269_s6 + $0xb8] sm:$0xff]   ;;  %839 = vmatpush3.bf16.msra.mxu0 %v959_v3  ;;  %v964_v8 = vld [vmem:[%s1269_s6 + $0xb0] sm:$0xff]   ;;  %v968_v12 = vld [vmem:[%s1269_s6 + $0xa8] sm:$0xff]  }
  0x47   : > { %861 = vmatpush3.bf16.msra.mxu1 %v960_v4  ;;  %840 = vmatprep.subr.bf16.mxu0 %v961_v5  ;;  %v969_v13 = vld [vmem:[%s1269_s6 + $0x60] sm:$0xff]   ;;  %v973_v17 = vld [vmem:[%s1269_s6 + $0x58] sm:$0xff]   ;;  %v977_v21 = vld [vmem:[%s1269_s6 + $0x50] sm:$0xff]  }
  0x48   : > { %862 = vmatprep.subr.bf16.mxu1 %v962_v6  ;;  %v970_v14 = vld [vmem:[%s1269_s6 + $0xe0] sm:$0xff]   ;;  %v974_v18 = vld [vmem:[%s1269_s6 + $0xd8] sm:$0xff]   ;;  %v978_v22 = vld [vmem:[%s1269_s6 + $0xd0] sm:$0xff]  }
  0x49   : > { %v971_v15 = vld [vmem:[%s1269_s6 + $0x20] sm:$0xff]   ;;  %v975_v19 = vld [vmem:[%s1269_s6 + $0x18] sm:$0xff]   ;;  %v979_v23 = vld [vmem:[%s1269_s6 + $0x10] sm:$0xff]  }
  0x4a   : > { %841 = vmatpush3.bf16.msra.mxu0 %v963_v7  ;;  %v972_v16 = vld [vmem:[%s1269_s6 + $0xa0] sm:$0xff]   ;;  %v976_v20 = vld [vmem:[%s1269_s6 + $0x98] sm:$0xff]   ;;  %v980_v24 = vld [vmem:[%s1269_s6 + $0x90] sm:$0xff]  }
  0x4b   : > { %863 = vmatpush3.bf16.msra.mxu1 %v964_v8  ;;  %842 = vmatprep.subr.bf16.mxu0 %v965_v9  ;;  %v981_v25 = vld [vmem:[%s1269_s6 + $0x48] sm:$0xff]   ;;  %v985_v29 = vld [vmem:[%s1269_s6 + $0x40] sm:$0xff]   ;;  %v276_v44 = vld [vmem:[#allocation2] sm:$0xff] }
  0x4c   : > { %864 = vmatprep.subr.bf16.mxu1 %v966_v10  ;;  %v982_v26 = vld [vmem:[%s1269_s6 + $0xc8] sm:$0xff]   ;;  %v986_v30 = vld [vmem:[%s1269_s6 + $0xc0] sm:$0xff]   ;;  %v277_v52 = vld [vmem:[#allocation2 + $0x8] sm:$0xff] }
  0x4d   : > { %v983_v27 = vld [vmem:[%s1269_s6 + $0x8] sm:$0xff]   ;;  %v987_v31 = vld [vmem:[%s1269_s6] sm:$0xff]  }
  0x4e   : > { %843 = vmatpush3.bf16.msra.mxu0 %v967_v11  ;;  %v984_v28 = vld [vmem:[%s1269_s6 + $0x88] sm:$0xff]   ;;  %v988_v32 = vld [vmem:[%s1269_s6 + $0x80] sm:$0xff]  }
  0x4f   : > { %865 = vmatpush3.bf16.msra.mxu1 %v968_v12  ;;  %844 = vmatprep.subr.bf16.mxu0 %v969_v13  ;;  %v989_v33 = vld [vmem:[%s1263_s26] ss:$16 sps:$4 sm:$0xff]   ;;  %v991_v34 = vld [vmem:[%s1263_s26 + $0x4] ss:$16 sps:$4 sm:$0xff]   ;;  %v992_v35 = vld [vmem:[%s1263_s26 + $0x8] ss:$16 sps:$4 sm:$0xff]  }
  0x50   : > { %866 = vmatprep.subr.bf16.mxu1 %v970_v14  ;;  %v994_v36 = vld [vmem:[%s1263_s26 + $0xc] ss:$16 sps:$4 sm:$0xff]   ;;  %590 = vmatprep.mubr.bf16.mxu0 %v991_v34 }
  0x51   : > { %631 = vmatprep.mubr.bf16.mxu1 %v994_v36 }
  0x52   : > { %845 = vmatpush3.bf16.msra.mxu0 %v971_v15 }
  0x53   : > { %867 = vmatpush3.bf16.msra.mxu1 %v972_v16  ;;  %846 = vmatprep.subr.bf16.mxu0 %v973_v17 }
  0x54   : > { %868 = vmatprep.subr.bf16.mxu1 %v974_v18 }
  0x56   : > { %847 = vmatpush3.bf16.msra.mxu0 %v975_v19 }
  0x57   : > { %869 = vmatpush3.bf16.msra.mxu1 %v976_v20  ;;  %848 = vmatprep.subr.bf16.mxu0 %v977_v21 }
  0x58   : > { %870 = vmatprep.subr.bf16.mxu1 %v978_v22 }
  0x5a   : > { %849 = vmatpush3.bf16.msra.mxu0 %v979_v23 }
  0x5b   : > { %871 = vmatpush3.bf16.msra.mxu1 %v980_v24  ;;  %850 = vmatprep.subr.bf16.mxu0 %v981_v25 }
  0x5c   : > { %872 = vmatprep.subr.bf16.mxu1 %v982_v26 }
  0x5e   : > { %851 = vmatpush3.bf16.msra.mxu0 %v983_v27 }
  0x5f   : > { %873 = vmatpush3.bf16.msra.mxu1 %v984_v28  ;;  %852 = vmatprep.subr.bf16.mxu0 %v985_v29 }
  0x60   : > { %874 = vmatprep.subr.bf16.mxu1 %v986_v30 }
  0x62   : > { %853 = vmatpush3.bf16.msra.mxu0 %v987_v31 }
  0x63   : > { %875 = vmatpush3.bf16.msra.mxu1 %v988_v32 }
  0x65   : > { %591 = vmatmul.mubr.bf16.vlgmr.msra.gmra.mxu0 %v989_v33 }
  0x66   : > { %632 = vmatmul.mubr.bf16.vlgmr.msra.gmra.mxu1 %v992_v35 }
 0x125   : > { %v854_v37 = vpop.f32.mrf.mxu0 }
 0x126   : > { %v876_v38 = vpop.f32.mrf.mxu1 }
 0x127   : > { %v855_v39 = vpop.f32.mrf.mxu0 }
 0x128   : > { %v856_v40 = vadd.f32 %v855_v39, %v854_v37  ;;  %v877_v41 = vpop.f32.mrf.mxu1 }
 0x129   : > { %v878_v42 = vadd.f32 %v877_v41, %v876_v38  ;;  %v857_v43 = vpop.f32.mrf.mxu0 }
 0x12a   : > { %v879_v45 = vpop.f32.mrf.mxu1 }
 0x12b   : > { %v634_v46 = vadd.f32 %v878_v42, %v856_v40  ;;  %v858_v47 = vpop.f32.mrf.mxu0 }
 0x12c   : > { %v859_v48 = vadd.f32 %v858_v47, %v857_v43  ;;  %v880_v49 = vpop.f32.mrf.mxu1 }
 0x12d   : > { %v640_v50 = vadd.f32 %v634_v46, %v276_v44  ;;  %v881_v51 = vadd.f32 %v880_v49, %v879_v45 }
 0x12f   : > { %642 = vst [vmem:[#allocation2] sm:$0xff] %v640_v50  ;;  %v637_v53 = vadd.f32 %v881_v51, %v859_v48  ;;  %647 = sbr.rel (%p830_p7) target bundleno = 318 (0x13e), region = 48 }
 0x131   : > { %v641_v54 = vadd.f32 %v637_v53, %v277_v52 }
 0x133   : > { %643 = vst [vmem:[#allocation2 + $0x8] sm:$0xff] %v641_v54 }
 0x134   : > { %v831_v56 = vld [vmem:[%s1353_s2] ss:$0 sm:$0xff] }
 0x136   : > { %v648_v55 = vld [vmem:[#allocation2] sm:$0xff] }
 0x137   : > { %v657_v58 = vadd.f32 %v831_v56, %v648_v55 }
 0x139   : > { %659 = vst [vmem:[#allocation8] sm:$0xff] %v657_v58 }
 0x13a   : > { %v649_v57 = vld [vmem:[#allocation2 + $0x8] sm:$0xff] }
 0x13b   : > { %v658_v59 = vadd.f32 %v831_v56, %v649_v57 }
 0x13d   : > { %660 = vst [vmem:[#allocation8 + $0x8] sm:$0xff] %v658_v59 }
 0x13e PF: > { %p1318_p11 = scmp.eq.s32.totalorder %s780_s18, 1  ;;  %s1143_s15 = smov [#allocation8]  }
 0x13f   : > { %s671_s8 = sshll.u32 %s1143_s15, 4  ;;  %s672_s8 = int_to_ptr.vmem [resolvable:$true] %s671_s8 }
 0x140   : > { %s1051_s9 = scalar_lea.vmem %s672_s8, 256  ;;  %p1058_p6 = scmp.lt.s32.totalorder %s672_s8, %s672_s8 }
 0x141   : > { %p1052_p3 = scmp.ne.s32.totalorder %s672_s8, %s1051_s9  ;;  %p1059_p8 = scmp.lt.s32.totalorder %s1051_s9, %s1051_s9 }
 0x143   : > { %p1053_p4 = pnand %p1052_p3, %p1318_p11  ;;  %p1060_p12 = por %p1059_p8, %p1058_p6 }
 0x145   : > { %p1054_p5 = pneg %p1053_p4 }
 0x147   : > { %p1061_p13 = pnand %p1060_p12, %p1054_p5 }
 0x149   : > { %1064 = shalt.err (!%p1061_p13)
}
 0x14a   : > { %s1144_s10 = smov 128   ;;  %s1145_s18 = smov 8  }
 0x14b   : > { %887 = dma.vmem_to_hbm [thread:$0]  (%p1318_p11), %s672_s8, 256, %s1354_s3, [#allocation5], %s1144_s10, %s1144_s10, %s1145_s18  }
 0x14c   : > { %1108 = dma.done.wait (%p1318_p11), [#allocation5], 256  }
 0x14d   : > { %1110 = vsyncadd (%p1318_p11), [#allocation5], 4294967040 }
 0x14e PF: > { %s20_s17 = sadd.s32 1, %s1133_s17   ;;  %s1360_s12 = smov %s1117_s13 }
 0x14f   : > { %p17_p10 = scmp.ge.s32.totalorder %s20_s17, 4   ;;  %s1361_s13 = smov %s1121_s14 }
 0x150   : > { %s1362_s14 = smov %s1217_s24  ;;  %s1363_s15 = smov %s1129_s16 }
 0x151   : > { %s1364_s16 = smov %s1366_s19  ;;  %19 = sbr.rel (!%p17_p10) target bundleno = 7 (0x7), region = 94 }
 0x156   :  { %687 = vsyncpa [#allocation4], 1 }
 0x157   :  { %689 = vsyncpa [#allocation4 + $0x1], 1 }
 0x158   :  { %690 = vsyncpa [#allocation7], 1 }
 0x159   :  { %692 = vsyncpa [#allocation7 + $0x1], 1 }
 0x15a   :  { %693 = vsyncpa [#allocation5], 1 }
 0x15b   :  { %695 = vsyncpa [#allocation5 + $0x1], 1 }

</bundles_post_ra>
